<compile_context>
chip_gen: v7x
topology: tpu7x:2x2x1
jax: 0.10.0
libtpu: 0.0.40
codegen_flags: <defaults>
</compile_context>

<pallas_src>
import jax
import jax.numpy as jnp
from jax.experimental import pallas as pl
from jax.experimental.pallas import tpu as pltpu

NUM_CHANNELS = 3
# Fixed luminance coefficients from the PyTorch module (requires_grad=False).
W_R, W_G, W_B = 0.2989, 0.587, 0.114

# Lane-dense spatial tile: multiple of 128, sized so the double-buffered VMEM
# footprint (input 2*3*TILE_L*4 B + output 2*1*TILE_L*4 B = 32*TILE_L B ~= 4 MiB)
# fits comfortably in v5e's 16 MiB / v6e's 32 MiB / v7x's 32 MiB scoped defaults
# while staying well past the ~512-row knee for HBM utilization.
MAX_TILE_L = 128 * 1024  # 131072 f32 elements


def _grayscale_kernel(x_ref, o_ref):
    # x_ref: VMEM (1, 3, TILE_L)  -- one batch element, one spatial tile
    # o_ref: VMEM (1, 1, TILE_L)  -- grayscale output tile
    # Weights are compile-time constants: pure VPU elementwise work, no SMEM.
    o_ref[0, 0, :] = (
        x_ref[0, 0, :] * W_R
        + x_ref[0, 1, :] * W_G
        + x_ref[0, 2, :] * W_B
    )


def grayscale(x: jax.Array) -> jax.Array:
    """(x * w[None, :, None, None]).sum(axis=1, keepdims=True) via Pallas."""
    assert x.ndim == 4 and x.shape[1] == NUM_CHANNELS, x.shape
    n, c, h, w = x.shape
    l = h * w

    # Flatten spatial dims so the last axis is one big lane-dense dimension.
    xf = x.reshape(n, c, l)

    # Pad the flattened axis up to a multiple of 128 lanes so every block
    # satisfies the (8, 128) layout rule, then pick a large lane-dense tile.
    l_pad = ((l + 127) // 128) * 128
    tile_l = min(MAX_TILE_L, l_pad)
    if l_pad != l:
        xf = jnp.pad(xf, ((0, 0), (0, 0), (0, l_pad - l)))

    grid = (n, pl.cdiv(l_pad, tile_l))

    out = pl.pallas_call(
        _grayscale_kernel,
        out_shape=jax.ShapeDtypeStruct((n, 1, l_pad), x.dtype),
        grid_spec=pl.GridSpec(
            grid=grid,
            in_specs=[
                # (batch, full channel dim, spatial tile)
                pl.BlockSpec((1, c, tile_l), lambda b, t: (b, 0, t)),
            ],
            # Lane-dense output block (tile_l is a multiple of 128 -> unmasked vst).
            out_specs=pl.BlockSpec((1, 1, tile_l), lambda b, t: (b, 0, t)),
        ),
        compiler_params=pltpu.CompilerParams(
            # Both axes independent -> megacore (v7x 2 TCs) can split the grid.
            dimension_semantics=("parallel", "parallel"),
        ),
    )(xf)

    if l_pad != l:
        out = out[:, :, :l]
    return out.reshape(n, 1, h, w)


if __name__ == "__main__":
    key = jax.random.PRNGKey(0)
    # Small NCHW input consistent with the module: batch=2, channels=3, 16x16.
    x = jax.random.normal(key, (2, 3, 16, 16), dtype=jnp.float32)

    out = jax.block_until_ready(grayscale(x))

    # Reference check in plain JAX.
    ref_w = jnp.array([W_R, W_G, W_B], dtype=jnp.float32)
    ref = (x * ref_w[None, :, None, None]).sum(axis=1, keepdims=True)
    assert out.shape == (2, 1, 16, 16), out.shape
    assert jnp.allclose(out, ref, atol=1e-6, rtol=1e-6), "mismatch vs reference"

    print("KERNEL_OK")
</pallas_src>

<mosaic_0001>
module attributes {stable_mosaic.version = 11 : i64} {
  func.func @_grayscale_kernel(%arg0: i32, %arg1: i32, %arg2: memref<1x3x256xf32, #tpu.memory_space<vmem>>, %arg3: memref<1x1x256xf32, #tpu.memory_space<vmem>>) attributes {dimension_semantics = [#tpu.dimension_semantics<parallel>, #tpu.dimension_semantics<parallel>], iteration_bounds = array<i64: 2, 1>, scalar_prefetch = 0 : i64, scratch_operands = 0 : i64, tpu.core_type = #tpu.core_type<tc>, window_params = [{transform_indices = @transform_0, window_bounds = array<i64: 1, 3, 256>}, {transform_indices = @transform_1, window_bounds = array<i64: 1, 1, 256>}]} {
    %c0 = arith.constant 0 : index
    %c0_0 = arith.constant 0 : index
    %c0_1 = arith.constant 0 : index
    %0 = vector.load %arg2[%c0, %c0_0, %c0_1] : memref<1x3x256xf32, #tpu.memory_space<vmem>>, vector<1x1x256xf32>
    %1 = vector.shape_cast %0 : vector<1x1x256xf32> to vector<256xf32>
    %cst = arith.constant 2.989000e-01 : f32
    %2 = vector.broadcast %cst : f32 to vector<256xf32>
    %3 = arith.mulf %1, %2 : vector<256xf32>
    %c0_2 = arith.constant 0 : index
    %c1 = arith.constant 1 : index
    %c0_3 = arith.constant 0 : index
    %4 = vector.load %arg2[%c0_2, %c1, %c0_3] : memref<1x3x256xf32, #tpu.memory_space<vmem>>, vector<1x1x256xf32>
    %5 = vector.shape_cast %4 : vector<1x1x256xf32> to vector<256xf32>
    %cst_4 = arith.constant 5.870000e-01 : f32
    %6 = vector.broadcast %cst_4 : f32 to vector<256xf32>
    %7 = arith.mulf %5, %6 : vector<256xf32>
    %8 = arith.addf %3, %7 : vector<256xf32>
    %c0_5 = arith.constant 0 : index
    %c2 = arith.constant 2 : index
    %c0_6 = arith.constant 0 : index
    %9 = vector.load %arg2[%c0_5, %c2, %c0_6] : memref<1x3x256xf32, #tpu.memory_space<vmem>>, vector<1x1x256xf32>
    %10 = vector.shape_cast %9 : vector<1x1x256xf32> to vector<256xf32>
    %cst_7 = arith.constant 1.140000e-01 : f32
    %11 = vector.broadcast %cst_7 : f32 to vector<256xf32>
    %12 = arith.mulf %10, %11 : vector<256xf32>
    %13 = arith.addf %8, %12 : vector<256xf32>
    %c0_8 = arith.constant 0 : index
    %c0_9 = arith.constant 0 : index
    %c0_10 = arith.constant 0 : index
    %14 = vector.load %arg3[%c0_8, %c0_9, %c0_10] : memref<1x1x256xf32, #tpu.memory_space<vmem>>, vector<1x1x256xf32>
    %15 = vector.shape_cast %14 : vector<1x1x256xf32> to vector<256xf32>
    %16 = vector.shape_cast %13 : vector<256xf32> to vector<1x1x256xf32>
    tpu.vector_store %arg3[%c0_8, %c0_9, %c0_10], %16 {strides = array<i32>} : memref<1x1x256xf32, #tpu.memory_space<vmem>>, vector<1x1x256xf32>,
    return
  }
  func.func @transform_0(%arg0: i32, %arg1: i32) -> (i32, i32, i32) {
    %c0_i32 = arith.constant 0 : i32
    %c0_i32_0 = arith.constant 0 : i32
    return %arg0, %c0_i32, %arg1 : i32, i32, i32
  }
  func.func @transform_1(%arg0: i32, %arg1: i32) -> (i32, i32, i32) {
    %c0_i32 = arith.constant 0 : i32
    %c0_i32_0 = arith.constant 0 : i32
    return %arg0, %c0_i32, %arg1 : i32, i32, i32
  }
}

</mosaic_0001>

<bundles_post_ra>
// kernel: tpu_custom_call.1
= control target key start
LH: loop header
LB: loop body
LE: loop exit
PB: predicated region body
PF: predicated region fallthrough
CT: control target
= control target key end

     0   :  { %6 = vsyncpa [#allocation3], 0  ;;  %s529_s0 = inlined_call_operand.vmem [shape: f32[2,3,256], index: 0, kind: input, shape index: {}]   ;;  %s530_s1 = inlined_call_operand.hbm [shape: f32[2,1,256], index: 1, kind: output, shape index: {}]  }
   0x1   :  { %8 = vsyncpa [#allocation3 + $0x1], 0  ;;  %s417_s6 = smov 0   ;;  %s419_s7 = smov 0  }
   0x2   :  { %s421_s8 = smov 0   ;;  %s423_s9 = smov 0  }
   0x3   :  { %s425_s10 = smov 0   ;;  %s427_s11 = smov 0  }
   0x4 LB: > { %s254_s12 = sadd.s32 4294967295, %s404_s11   ;;  %s255_s13 = sadd.s32 4294967294, %s404_s11   ;;  %s404_s11 = sphi %s427_s11, %s14_s11   ;;  %s400_s10 = sphi %s425_s10, %s537_s10   ;;  %s396_s9 = sphi %s423_s9, %s536_s9   ;;  %s392_s8 = sphi %s421_s8, %s535_s8   ;;  %s388_s7 = sphi %s419_s7, %s534_s7   ;;  %s384_s6 = sphi %s417_s6, %s533_s6  }
   0x5   : > { %s26_s14 = sadd.s32 1, %s400_s10  ;;  %s63_s15 = sadd.s32 1, %s392_s8 }
   0x6   : > { %p28_p0 = scmp.ge.s32.totalorder %s26_s14, 2  ;;  %p73_p1 = scmp.ne.s32.totalorder %s392_s8, %s388_s7 }
   0x7   : > { %p74_p2 = scmp.eq.s32.totalorder %s254_s12, 1  ;;  %p79_p3 = scmp.ne.s32.totalorder %s388_s7, %s384_s6 }
   0x8   : > { %s539_s14 = smov (%p28_p0, %s26_s14), 0  ;;  %p80_p5 = scmp.eq.s32.totalorder %s255_s13, 1 }
   0x9   : > { %p457_p4 = por %p74_p2, %p73_p1  ;;  %s58_s17 = ssub.s32 %s400_s10, %s539_s14 }
   0xa   : > { %p258_p6 = scmp.ge.s32.totalorder %s404_s11, 1  ;;  %p61_p7 = scmp.eq.s32.totalorder %s58_s17, 0 }
   0xb   : > { %p464_p8 = por %p80_p5, %p79_p3  ;;  %p111_p9 = scmp.lt.s32.totalorder %s404_s11, 3 }
   0xc   : > { %s470_s19 = scalar_select %p61_p7, %s392_s8, %s63_s15  }
   0xd   : > { %p112_p10 = pnand %p258_p6, %p111_p9 }
   0xe   : > { %s132_s20 = sand.u32 (!%p112_p10), 1, %s388_s7   ;;  %p136_p11 = scmp.lt.s32.totalorder (!%p112_p10), %s396_s9, 1  ;;  %v156_v2 = vlaneseq (!%p112_p10) }
   0xf   : > { %115 = sbr.rel (%p112_p10) target bundleno = 47 (0x2f), region = 24  ;;  %s259_s21 = sshll.u32 (!%p112_p10), %s132_s20, 1 }
  0x10   : > { %s134_s27 = scalar_lea.vmem (!%p112_p10), [#allocation2], %s259_s21  ;;  %s270_s29 = sshll.u32 (!%p112_p10), %s396_s9, 5  ;;  %vm158_vm0 = vcmp.lt.s32.totalorder (!%p112_p10), %v156_v2, 256 }
  0x11   : > { %s178_s28 = sshll.u32 (!%p112_p10), %s134_s27, 4  ;;  %s484_s3 = scalar_lea.hbm (!%p112_p10), %s530_s1, %s270_s29  ;;  %s479_s28 = int_to_ptr.vmem [resolvable:$true] %s178_s28 }
  0x12   : > { %s162_s4 = scalar_lea.sflag (!%p112_p10), [#allocation3], %s132_s20  ;;  %s326_s5 = scalar_lea.vmem (!%p112_p10), %s479_s28, 32 }
  0x13   : > { %p327_p12 = scmp.ne.s32.totalorder (!%p112_p10), %s479_s28, %s326_s5 }
  0x15   : > { %p328_p13 = pnand (!%p112_p10), %p327_p12, %p457_p4 }
  0x16   : > { %s137_s22 = scalar_select %p136_p11, %s396_s9, 1 }
  0x17   : > { %p329_p0 = pneg %p328_p13  ;;  %s406_s9 = smov [#allocation2]  }
  0x18   : > { %s269_s23 = sshll.u32 %s137_s22, 3  ;;  %s330_s12 = sshll.u32 %s406_s9, 4  ;;  %s331_s12 = int_to_ptr.vmem [resolvable:$false] %s330_s12 }
  0x19   : > { %s143_s26 = scalar_lea.vmem %s529_s0, %s269_s23  ;;  %s332_s13 = scalar_lea.vmem %s331_s12, 64 }
  0x1a   : > { %v146_v0 = vld [vmem:[%s143_s26] ss:$4 sm:$0x3]  ;;  %v262_v1 = vld [vmem:[%s143_s26 + $0x1] ss:$4 sm:$0x3]  ;;  %p333_p1 = scmp.lt.s32.totalorder %s479_s28, %s331_s12  ;;  %p334_p2 = scmp.lt.s32.totalorder %s332_s13, %s326_s5 }
  0x1b   : > { %v147_v3 = vmul.f32 0.2989, %v146_v0  ;;  %v150_v4 = vmul.f32 0.587, %v262_v1 }
  0x1c   : > { %v263_v5 = vld [vmem:[%s143_s26 + $0x2] ss:$4 sm:$0x3]  ;;  %p335_p3 = por %p334_p2, %p333_p1 }
  0x1d   : > { %v151_v6 = vadd.f32 %v150_v4, %v147_v3  ;;  %v154_v7 = vmul.f32 0.114, %v263_v5 }
  0x1e   : > { %p336_p5 = pnand %p335_p3, %p329_p0 }
  0x1f   : > { %v155_v8 = vadd.f32 %v154_v7, %v151_v6 }
  0x21   : > { %160 = vst.msk [vmem:[%s134_s27] sm:$0x3] %vm158_vm0, %v155_v8 }
  0x22   : > { %339 = shalt.err (!%p336_p5)
}
  0x23   : > { %s340_s15 = scalar_lea.hbm %s484_s3, 32  ;;  %s344_s21 = scalar_lea.hbm %s530_s1, 64 }
  0x24   : > { %p341_p6 = scmp.ne.s32.totalorder %s484_s3, %s340_s15  ;;  %p345_p10 = scmp.lt.u32.totalorder %s484_s3, %s530_s1 }
  0x25   : > { %p346_p11 = scmp.lt.u32.totalorder %s344_s21, %s340_s15  ;;  %p348_p13 = scmp.lt.u32.totalorder %s340_s15, %s484_s3 }
  0x26   : > { %p342_p7 = pnand %p341_p6, %p457_p4 }
  0x27   : > { %p347_p12 = por %p346_p11, %p345_p10 }
  0x28   : > { %p343_p9 = pneg %p342_p7 }
  0x29   : > { %p349_p0 = por %p348_p13, %p347_p12 }
  0x2b   : > { %p350_p1 = pnand %p349_p0, %p343_p9 }
  0x2d   : > { %353 = shalt.err (!%p350_p1)
}
  0x2e   : > { %271 = dma.vmem_to_hbm [thread:$0]  (%p457_p4), %s479_s28, 32, %s484_s3, %s162_s4  }
  0x2f PF: > { %p277_p2 = scmp.ge.s32.totalorder %s404_s11, 2  ;;  %s190_s24 = sand.u32 1, %s384_s6  }
  0x30   : > { %s191_s25 = scalar_lea.sflag [#allocation3], %s190_s24 }
  0x31   : > { %p274_p3 = pnand %p277_p2, %p464_p8 }
  0x33   : > { %379 = dma.done.wait (!%p274_p3), %s191_s25, 32  }
  0x34   : > { %381 = vsyncadd (!%p274_p3), %s191_s25, 4294967264  ;;  %s14_s11 = sadd.s32 1, %s404_s11   ;;  %s533_s6 = smov %s388_s7 }
  0x35   : > { %p11_p5 = scmp.ge.s32.totalorder %s14_s11, 4   ;;  %s534_s7 = smov %s392_s8 }
  0x36   : > { %s535_s8 = smov %s470_s19  ;;  %s536_s9 = smov %s400_s10 }
  0x37   : > { %s537_s10 = smov %s539_s14  ;;  %13 = sbr.rel (!%p11_p5) target bundleno = 4 (0x4), region = 61 }
  0x3e   :  { %196 = vsyncpa [#allocation3], 1 }
  0x3f   :  { %198 = vsyncpa [#allocation3 + $0x1], 1 }

</bundles_post_ra>
